<compile_context>
chip_gen: v5e
topology: v5e:2x2
jax: 0.10.0
libtpu: 0.0.40
codegen_flags: <defaults>
</compile_context>

<pallas_src>
import functools

import jax
import jax.numpy as jnp
from jax.experimental import pallas as pl
from jax.experimental.pallas import tpu as pltpu


def _round_up(n, m):
    return ((n + m - 1) // m) * m


def _vmlp_kernel(x_ref, w1_ref, b1_ref, w2_ref, b2_ref, y_ref, *, precision):
    """Fused MLP head on one batch tile: matmul -> LeakyReLU -> matmul."""
    x = x_ref[...]                                   # (TB, state_dim)

    # Linear 1 (MXU, f32 accumulation) + LeakyReLU (VPU single max).
    h = jnp.dot(x, w1_ref[...], preferred_element_type=jnp.float32,
                precision=precision) + b1_ref[...]
    h = jnp.maximum(h, 0.01 * h)                     # nn.LeakyReLU default slope
    # Dropout: inference mode -> identity.

    # Linear 2 (MXU). Cast h to the weight dtype (no-op for f32 params, keeps
    # the MXU in fast bf16 mode for bf16 params); accumulate in f32.
    y = jnp.dot(h.astype(w2_ref.dtype), w2_ref[...],
                preferred_element_type=jnp.float32,
                precision=precision) + b2_ref[...]

    # Lane-dense full-width store (output columns padded to a multiple of 128
    # by the wrapper); mu/log_var split happens in the wrapper.
    y_ref[...] = y.astype(y_ref.dtype)


def variational_mlp_head(x, w1, b1, w2, b2, latent_dim, *,
                         tb=1024, compute_dtype=None, precision=None,
                         min_pallas_batch=64, force_pallas=False):
    """x: (B, state_dim) -> (mu: (B, latent_dim), log_var: (B, latent_dim))."""
    B, state_dim = x.shape
    hid_dim = w1.shape[1]
    out_dim = w2.shape[1]                            # 2 * latent_dim
    assert out_dim == 2 * latent_dim

    b1 = jnp.asarray(b1).reshape(1, -1)
    b2 = jnp.asarray(b2).reshape(1, -1)

    # Optional reduced-precision compute path (halves HBM bytes; f32 accumulate
    # is preserved inside the kernel). Default keeps the input dtype exactly.
    if compute_dtype is not None:
        x = x.astype(compute_dtype)
        w1 = w1.astype(compute_dtype)
        b1 = b1.astype(compute_dtype)
        w2 = w2.astype(compute_dtype)
        b2 = b2.astype(compute_dtype)

    # Tiny-batch short circuit: a pallas_call cannot amortize its fixed cost on
    # a 2x32x32 matmul; let XLA fuse it instead.
    if B <= min_pallas_batch and not force_pallas:
        h = jnp.dot(x, w1, preferred_element_type=jnp.float32,
                    precision=precision) + b1
        h = jnp.maximum(h, 0.01 * h)
        y = jnp.dot(h.astype(w2.dtype), w2, preferred_element_type=jnp.float32,
                    precision=precision) + b2
        y = y.astype(x.dtype)
        return y[:, :latent_dim], y[:, latent_dim:out_dim]

    # ---- Lane-dense output: pad linear-2 output columns to a multiple of 128.
    out_pad = _round_up(out_dim, 128)
    if out_pad != out_dim:
        w2p = jnp.pad(w2, ((0, 0), (0, out_pad - out_dim)))
        b2p = jnp.pad(b2, ((0, 0), (0, out_pad - out_dim)))
    else:
        w2p, b2p = w2, b2

    # ---- Batch tile: big tiles (up to `tb`) to amortize per-step overhead,
    # but at least 4 grid steps when B allows it, so v7x's two TensorCores each
    # get >= 2 pipelined steps (DMA/compute overlap inside each core).
    if B <= 4 * 8:
        tb_eff = B                                   # single full-extent block
    else:
        tb_eff = min(tb, max(8, _round_up(pl.cdiv(B, 4), 8)))
    grid = (pl.cdiv(B, tb_eff),)

    itemsize = jnp.dtype(x.dtype).itemsize
    w_itemsize = jnp.dtype(w1.dtype).itemsize
    weight_bytes = (state_dim * hid_dim + hid_dim
                    + hid_dim * out_pad + out_pad) * w_itemsize

    # Resident params: constant index_map keeps them in VMEM across all steps.
    # If they are big, single-buffer them (they are never re-fetched, so the
    # second buffer is pure waste — matters on v7x's 64 MiB VMEM).
    single_buffer_weights = weight_bytes > (4 << 20)

    def _resident_spec(shape):
        if single_buffer_weights:
            return pl.BlockSpec(shape, lambda i: (0, 0),
                                pipeline_mode=pl.Buffered(1))
        return pl.BlockSpec(shape, lambda i: (0, 0))

    in_specs = [
        # x: batch-tiled, double-buffered across the grid.
        pl.BlockSpec((tb_eff, state_dim), lambda i: (i, 0)),
        _resident_spec((state_dim, hid_dim)),
        _resident_spec((1, hid_dim)),
        _resident_spec((hid_dim, out_pad)),
        _resident_spec((1, out_pad)),
    ]

    # VMEM budget estimate; raise the scoped limit only if we actually need to
    # (cap at 64 MiB so it stays legal on v7x).
    weight_buf = 1 if single_buffer_weights else 2
    vmem_est = (weight_bytes * weight_buf
                + 2 * tb_eff * state_dim * itemsize      # x (double-buffered)
                + 2 * tb_eff * out_pad * itemsize)       # y (double-buffered)
    cp_kwargs = dict(dimension_semantics=("parallel",))  # shard batch over TCs
    if vmem_est > (32 << 20):
        cp_kwargs["vmem_limit_bytes"] = min(int(vmem_est * 1.25) + (1 << 20),
                                            64 << 20)
    compiler_params = pltpu.CompilerParams(**cp_kwargs)

    cost = pl.CostEstimate(
        flops=2 * B * (state_dim * hid_dim + hid_dim * out_pad),
        transcendentals=0,
        bytes_accessed=(B * state_dim * itemsize         # x
                        + weight_bytes                   # params
                        + B * out_pad * itemsize),       # y
    )

    kernel = functools.partial(_vmlp_kernel, precision=precision)

    y = pl.pallas_call(
        kernel,
        out_shape=jax.ShapeDtypeStruct((B, out_pad), x.dtype),
        grid=grid,
        in_specs=in_specs,
        out_specs=pl.BlockSpec((tb_eff, out_pad), lambda i: (i, 0)),
        compiler_params=compiler_params,
        cost_estimate=cost,
    )(x, w1, b1, w2p, b2p)

    # torch.split(latent_dim, dim=1) — free layout op, fused by XLA; also drops
    # the zero-padded lanes.
    mu = y[:, :latent_dim]
    log_var = y[:, latent_dim:out_dim]
    return mu, log_var


def init_params(key, state_dim, hid_dim, latent_dim, dtype=jnp.float32):
    """Deterministic init mimicking nn.Linear default (U[-1/sqrt(fan_in), +])."""
    k1, k2, k3, k4 = jax.random.split(key, 4)
    lim1 = 1.0 / (state_dim ** 0.5)
    lim2 = 1.0 / (hid_dim ** 0.5)
    w1 = jax.random.uniform(k1, (state_dim, hid_dim), dtype, -lim1, lim1)
    b1 = jax.random.uniform(k2, (1, hid_dim), dtype, -lim1, lim1)
    w2 = jax.random.uniform(k3, (hid_dim, 2 * latent_dim), dtype, -lim2, lim2)
    b2 = jax.random.uniform(k4, (1, 2 * latent_dim), dtype, -lim2, lim2)
    return w1, b1, w2, b2


def _reference(x, w1, b1, w2, b2, latent_dim):
    h = x @ w1 + b1
    h = jnp.maximum(h, 0.01 * h)
    y = h @ w2 + b2
    return y[:, :latent_dim], y[:, latent_dim:]


if __name__ == "__main__":
    key = jax.random.PRNGKey(0)
    kx, kp, kx2, kx3 = jax.random.split(key, 4)

    # Small shapes consistent with the module's forward.
    batch, state_dim, hid_dim, latent_dim = 2, 32, 32, 8
    x = jax.random.normal(kx, (batch, state_dim), dtype=jnp.float32)
    w1, b1, w2, b2 = init_params(kp, state_dim, hid_dim, latent_dim)

    # 1) Tiny batch -> XLA short-circuit path.
    mu, log_var = variational_mlp_head(x, w1, b1, w2, b2, latent_dim)
    jax.block_until_ready((mu, log_var))
    mu_ref, lv_ref = _reference(x, w1, b1, w2, b2, latent_dim)
    assert mu.shape == (batch, latent_dim)
    assert log_var.shape == (batch, latent_dim)
    assert jnp.allclose(mu, mu_ref, atol=1e-5), "mu mismatch (tiny)"
    assert jnp.allclose(log_var, lv_ref, atol=1e-5), "log_var mismatch (tiny)"

    # 2) Batch large enough to exercise the Pallas kernel: grid=(4,) with
    #    tb=128, resident weights, padded lane-dense output stores.
    B2 = 512
    x2 = jax.random.normal(kx2, (B2, state_dim), dtype=jnp.float32)
    mu2, lv2 = variational_mlp_head(x2, w1, b1, w2, b2, latent_dim)
    jax.block_until_ready((mu2, lv2))
    mu2_ref, lv2_ref = _reference(x2, w1, b1, w2, b2, latent_dim)
    assert jnp.allclose(mu2, mu2_ref, atol=1e-5), "mu mismatch (tiled)"
    assert jnp.allclose(lv2, lv2_ref, atol=1e-5), "log_var mismatch (tiled)"

    # 3) Ragged batch (last block overhangs B; Pallas masks the writeback).
    B3 = 200
    x3 = jax.random.normal(kx3, (B3, state_dim), dtype=jnp.float32)
    mu3, lv3 = variational_mlp_head(x3, w1, b1, w2, b2, latent_dim)
    jax.block_until_ready((mu3, lv3))
    mu3_ref, lv3_ref = _reference(x3, w1, b1, w2, b2, latent_dim)
    assert jnp.allclose(mu3, mu3_ref, atol=1e-5), "mu mismatch (ragged)"
    assert jnp.allclose(lv3, lv3_ref, atol=1e-5), "log_var mismatch (ragged)"

    # 4) bf16 compute path (halves HBM traffic; f32 accumulation kept).
    mu_bf, lv_bf = variational_mlp_head(x2, w1, b1, w2, b2, latent_dim,
                                        compute_dtype=jnp.bfloat16)
    jax.block_until_ready((mu_bf, lv_bf))
    assert jnp.allclose(mu_bf.astype(jnp.float32), mu2_ref, atol=5e-2), \
        "mu mismatch (bf16)"
    assert jnp.allclose(lv_bf.astype(jnp.float32), lv2_ref, atol=5e-2), \
        "log_var mismatch (bf16)"

    print("KERNEL_OK")
</pallas_src>

<mosaic_0001>
module attributes {stable_mosaic.version = 11 : i64} {
  func.func @_vmlp_kernel(%arg0: i32, %arg1: memref<128x32xf32, #tpu.memory_space<vmem>>, %arg2: memref<32x32xf32, #tpu.memory_space<vmem>>, %arg3: memref<1x32xf32, #tpu.memory_space<vmem>>, %arg4: memref<32x128xf32, #tpu.memory_space<vmem>>, %arg5: memref<1x128xf32, #tpu.memory_space<vmem>>, %arg6: memref<128x128xf32, #tpu.memory_space<vmem>>) attributes {dimension_semantics = [#tpu.dimension_semantics<parallel>], iteration_bounds = array<i64: 4>, scalar_prefetch = 0 : i64, scratch_operands = 0 : i64, tpu.core_type = #tpu.core_type<tc>, window_params = [{transform_indices = @transform_0, window_bounds = array<i64: 128, 32>}, {pipeline_mode = #tpu.pipeline_mode<synchronous>, transform_indices = @transform_1, window_bounds = array<i64: 32, 32>}, {pipeline_mode = #tpu.pipeline_mode<synchronous>, transform_indices = @transform_2, window_bounds = array<i64: 1, 32>}, {pipeline_mode = #tpu.pipeline_mode<synchronous>, transform_indices = @transform_3, window_bounds = array<i64: 32, 128>}, {pipeline_mode = #tpu.pipeline_mode<synchronous>, transform_indices = @transform_4, window_bounds = array<i64: 1, 128>}, {transform_indices = @transform_5, window_bounds = array<i64: 128, 128>}]} {
    %c0 = arith.constant 0 : index
    %c0_0 = arith.constant 0 : index
    %0 = vector.load %arg1[%c0, %c0_0] : memref<128x32xf32, #tpu.memory_space<vmem>>, vector<128x32xf32>
    %c0_1 = arith.constant 0 : index
    %c0_2 = arith.constant 0 : index
    %1 = vector.load %arg2[%c0_1, %c0_2] : memref<32x32xf32, #tpu.memory_space<vmem>>, vector<32x32xf32>
    %cst = arith.constant dense<0.000000e+00> : vector<128x32xf32>
    %2 = tpu.matmul %0, %1, %cst {dimension_numbers = #tpu.dot_dimension_numbers<[1], [0], [0], [1], [0, 0, 1, 1], [], []>} : vector<128x32xf32>, vector<32x32xf32>, vector<128x32xf32> -> vector<128x32xf32>
    %c0_3 = arith.constant 0 : index
    %c0_4 = arith.constant 0 : index
    %3 = vector.load %arg3[%c0_3, %c0_4] : memref<1x32xf32, #tpu.memory_space<vmem>>, vector<1x32xf32>
    %4 = vector.broadcast %3 : vector<1x32xf32> to vector<128x32xf32>
    %5 = arith.addf %2, %4 : vector<128x32xf32>
    %cst_5 = arith.constant 0.00999999977 : f32
    %6 = vector.broadcast %cst_5 : f32 to vector<128x32xf32>
    %7 = arith.mulf %6, %5 : vector<128x32xf32>
    %8 = arith.maximumf %5, %7 : vector<128x32xf32>
    %c0_6 = arith.constant 0 : index
    %c0_7 = arith.constant 0 : index
    %9 = vector.load %arg4[%c0_6, %c0_7] : memref<32x128xf32, #tpu.memory_space<vmem>>, vector<32x128xf32>
    %cst_8 = arith.constant dense<0.000000e+00> : vector<128x128xf32>
    %10 = tpu.matmul %8, %9, %cst_8 {dimension_numbers = #tpu.dot_dimension_numbers<[1], [0], [0], [1], [0, 0, 1, 1], [], []>} : vector<128x32xf32>, vector<32x128xf32>, vector<128x128xf32> -> vector<128x128xf32>
    %c0_9 = arith.constant 0 : index
    %c0_10 = arith.constant 0 : index
    %11 = vector.load %arg5[%c0_9, %c0_10] : memref<1x128xf32, #tpu.memory_space<vmem>>, vector<1x128xf32>
    %12 = vector.broadcast %11 : vector<1x128xf32> to vector<128x128xf32>
    %13 = arith.addf %10, %12 : vector<128x128xf32>
    %c0_11 = arith.constant 0 : index
    %c0_12 = arith.constant 0 : index
    %14 = vector.load %arg6[%c0_11, %c0_12] : memref<128x128xf32, #tpu.memory_space<vmem>>, vector<128x128xf32>
    tpu.vector_store %arg6[%c0_11, %c0_12], %13 {strides = array<i32>} : memref<128x128xf32, #tpu.memory_space<vmem>>, vector<128x128xf32>,
    return
  }
  func.func @transform_0(%arg0: i32) -> (i32, i32) {
    %c0_i32 = arith.constant 0 : i32
    %c0_i32_0 = arith.constant 0 : i32
    return %arg0, %c0_i32 : i32, i32
  }
  func.func @transform_1(%arg0: i32) -> (i32, i32) {
    %c0_i32 = arith.constant 0 : i32
    %c0_i32_0 = arith.constant 0 : i32
    %c0_i32_1 = arith.constant 0 : i32
    return %c0_i32, %c0_i32_0 : i32, i32
  }
  func.func @transform_2(%arg0: i32) -> (i32, i32) {
    %c0_i32 = arith.constant 0 : i32
    %c0_i32_0 = arith.constant 0 : i32
    %c0_i32_1 = arith.constant 0 : i32
    return %c0_i32, %c0_i32_0 : i32, i32
  }
  func.func @transform_3(%arg0: i32) -> (i32, i32) {
    %c0_i32 = arith.constant 0 : i32
    %c0_i32_0 = arith.constant 0 : i32
    %c0_i32_1 = arith.constant 0 : i32
    return %c0_i32, %c0_i32_0 : i32, i32
  }
  func.func @transform_4(%arg0: i32) -> (i32, i32) {
    %c0_i32 = arith.constant 0 : i32
    %c0_i32_0 = arith.constant 0 : i32
    %c0_i32_1 = arith.constant 0 : i32
    return %c0_i32, %c0_i32_0 : i32, i32
  }
  func.func @transform_5(%arg0: i32) -> (i32, i32) {
    %c0_i32 = arith.constant 0 : i32
    %c0_i32_0 = arith.constant 0 : i32
    return %arg0, %c0_i32 : i32, i32
  }
}

</mosaic_0001>

<bundles_post_ra>
// kernel: tpu_custom_call.1
= control target key start
LH: loop header
LB: loop body
LE: loop exit
PB: predicated region body
PF: predicated region fallthrough
CT: control target
= control target key end

     0   :  { %10 = vsyncpa [#allocation3], 0  ;;  %s1008_s0 = inlined_call_operand.vmem [shape: f32[512,32], index: 0, kind: input, shape index: {}]   ;;  %s1009_s1 = inlined_call_operand.vmem [shape: f32[32,32], index: 1, kind: input, shape index: {}]   ;;  %s1010_s2 = inlined_call_operand.vmem [shape: f32[1,32], index: 2, kind: input, shape index: {}]   ;;  %s1011_s3 = inlined_call_operand.vmem [shape: f32[32,128], index: 3, kind: input, shape index: {}]   ;;  %s1012_s4 = inlined_call_operand.vmem [shape: f32[1,128], index: 4, kind: input, shape index: {}]   ;;  %s1013_s5 = inlined_call_operand.hbm [shape: f32[512,128], index: 5, kind: output, shape index: {}]  }
   0x1   :  { %12 = vsyncpa [#allocation3 + $0x1], 0  ;;  %s803_s18 = smov 0   ;;  %s805_s19 = smov 0  }
   0x2   :  { %s807_s20 = smov 0   ;;  %s809_s21 = smov 0  }
   0x3 LB: > { %s824_s22 = sadd.s32 4294967295, %s769_s21   ;;  %s611_s23 = sadd.s32 4294967294, %s769_s21   ;;  %s769_s21 = sphi %s809_s21, %s1019_s21   ;;  %s765_s20 = sphi %s807_s20, %s1018_s20   ;;  %s761_s19 = sphi %s805_s19, %s1017_s19   ;;  %s757_s18 = sphi %s803_s18, %s1016_s18  }
   0x4   : > { %s828_s24 = sadd.s32 1, %s769_s21   ;;  %s135_s25 = sadd.s32 1, %s765_s20 }
   0x5   : > { %s132_s26 = ssub.s32 %s769_s21, %s828_s24  ;;  %p145_p0 = scmp.ne.s32.totalorder %s765_s20, %s761_s19 }
   0x6   : > { %p133_p1 = scmp.eq.s32.totalorder %s132_s26, 0  ;;  %p146_p2 = scmp.eq.s32.totalorder %s824_s22, 3 }
   0x7   : > { %p151_p3 = scmp.ne.s32.totalorder %s761_s19, %s757_s18  ;;  %p152_p4 = scmp.eq.s32.totalorder %s611_s23, 3 }
   0x8   : > { %s839_s27 = scalar_select %p133_p1, %s765_s20, %s135_s25  }
   0x9   : > { %p841_p5 = por %p146_p2, %p145_p0  ;;  %p845_p6 = por %p152_p4, %p151_p3 }
   0xa   : > { %p614_p7 = scmp.ge.s32.totalorder %s769_s21, 1  ;;  %p191_p8 = scmp.lt.s32.totalorder %s769_s21, 5 }
   0xc   : > { %p192_p9 = pnand %p614_p7, %p191_p8 }
   0xd   : > { %s616_s9 = sshll.u32 (!%p192_p9), %s824_s22, 4  ;;  %s216_s12 = sand.u32 (!%p192_p9), 1, %s761_s19  }
   0xe   : > { %195 = sbr.rel (%p192_p9) target bundleno = 359 (0x167), region = 40  ;;  %p220_p10 = scmp.lt.s32.totalorder (!%p192_p9), %s616_s9, 63 }
   0xf   : > { %s615_s13 = sshll.u32 (!%p192_p9), %s216_s12, 7  ;;  %s534_s7 = scalar_lea.sflag (!%p192_p9), [#allocation3], %s216_s12 }
  0x10   : > { %s956_s16 = scalar_lea.vmem (!%p192_p9), [#allocation2], %s615_s13  ;;  %s727_s11 = scalar_lea.hbm (!%p192_p9), %s1013_s5, 512 }
  0x11   : > { %s546_s30 = sshll.u32 (!%p192_p9), %s956_s16, 4  ;;  %s547_s30 = int_to_ptr.vmem [resolvable:$true] %s546_s30 }
  0x13   : > { %v245_v0 = vld [vmem:[%s1009_s1 + $0x18] sm:$0xff]  ;;  %v244_v1 = vld [vmem:[%s1009_s1 + $0x10] sm:$0xff]  ;;  %v243_v2 = vld [vmem:[%s1009_s1 + $0x8] sm:$0xff]  ;;  %s1021_s9 = smov (!%p220_p10, %s616_s9), 63  ;;  %vm250_vm0 = vcmask 261120  }
  0x14   : > { %656 = vmatpush.msra.mxu2 %v245_v0  ;;  %311 = vmatpush.msra.mxu0 %v245_v0  ;;  %v242_v3 = vld [vmem:[%s1009_s1] sm:$0xff]  ;;  %s617_s14 = sshll.u32 %s1021_s9, 3  ;;  %v399_v20 = vld [vmem:[%s1011_s3 + $0x18] sm:$0xff]  ;;  %v398_v21 = vld [vmem:[%s1011_s3 + $0x10] sm:$0xff] }
  0x15   : > { %s867_s17 = scalar_lea.vmem %s1008_s0, %s617_s14  ;;  %660 = vmatpush.msra.mxu3 %v399_v20  ;;  %464 = vmatpush.msra.mxu1 %v399_v20  ;;  %v397_v22 = vld [vmem:[%s1011_s3 + $0x8] sm:$0xff]  ;;  %v396_v23 = vld [vmem:[%s1011_s3] sm:$0xff] }
  0x16   : > { %657 = vmatpush.msra.mxu2 %v244_v1  ;;  %312 = vmatpush.msra.mxu0 %v244_v1  ;;  %v234_v4 = vld [vmem:[%s867_s17 + $0x40] sm:$0xff]  ;;  %v235_v6 = vld [vmem:[%s867_s17 + $0x48] sm:$0xff]  ;;  %v236_v8 = vld [vmem:[%s867_s17 + $0x50] sm:$0xff] }
  0x17   : > { %v226_v5 = vld [vmem:[%s867_s17] sm:$0xff]  ;;  %v227_v7 = vld [vmem:[%s867_s17 + $0x8] sm:$0xff]  ;;  %v228_v9 = vld [vmem:[%s867_s17 + $0x10] sm:$0xff]  ;;  %661 = vmatpush.msra.mxu3 %v398_v21  ;;  %465 = vmatpush.msra.mxu1 %v398_v21 }
  0x18   : > { %658 = vmatpush.msra.mxu2 %v243_v2  ;;  %313 = vmatpush.msra.mxu0 %v243_v2  ;;  %v237_v10 = vld [vmem:[%s867_s17 + $0x58] sm:$0xff]  ;;  %v238_v12 = vld [vmem:[%s867_s17 + $0x60] sm:$0xff]  ;;  %v239_v14 = vld [vmem:[%s867_s17 + $0x68] sm:$0xff] }
  0x19   : > { %v229_v11 = vld [vmem:[%s867_s17 + $0x18] sm:$0xff]  ;;  %v230_v13 = vld [vmem:[%s867_s17 + $0x20] sm:$0xff]  ;;  %v231_v15 = vld [vmem:[%s867_s17 + $0x28] sm:$0xff]  ;;  %662 = vmatpush.msra.mxu3 %v397_v22  ;;  %466 = vmatpush.msra.mxu1 %v397_v22 }
  0x1a   : > { %659 = vmatpush.msra.mxu2 %v242_v3  ;;  %314 = vmatpush.msra.mxu0 %v242_v3  ;;  %v240_v16 = vld [vmem:[%s867_s17 + $0x70] sm:$0xff]  ;;  %v241_v18 = vld [vmem:[%s867_s17 + $0x78] sm:$0xff]  ;;  %v916_v24 = vld [vmem:[%s1010_s2] ss:$0 sm:$0xff] }
  0x1b   : > { %626 = vmatmul.msk.f32.vlgmr.msra.gmra.mxu2 %vm250_vm0, %v234_v4  ;;  %618 = vmatmul.msk.f32.vlgmr.msra.gmra.mxu0 %vm250_vm0, %v226_v5  ;;  %v232_v17 = vld [vmem:[%s867_s17 + $0x30] sm:$0xff]  ;;  %v233_v19 = vld [vmem:[%s867_s17 + $0x38] sm:$0xff]  ;;  %s655_s17 = sshll.u32 %s824_s22, 7 }
  0x1c   : > { %663 = vmatpush.msra.mxu3 %v396_v23  ;;  %467 = vmatpush.msra.mxu1 %v396_v23  ;;  %s545_s26 = scalar_lea.hbm %s1013_s5, %s655_s17 }
  0x1d   : > { %s548_s6 = sshll.u32 %s545_s26, 4  ;;  %s549_s6 = int_to_ptr.hbm [resolvable:$true] %s548_s6 }
  0x1e   : > { %s721_s8 = sshra.s32 %s549_s6, 4  ;;  %s722_s8 = int_to_ptr.hbm [resolvable:$true] %s721_s8 }
  0x1f   : > { %s723_s22 = scalar_lea.hbm %s722_s8, 128  ;;  %p728_p0 = scmp.lt.s32.totalorder %s722_s8, %s1013_s5 }
  0x20   : > { %p724_p11 = scmp.ne.s32.totalorder %s722_s8, %s723_s22  ;;  %p729_p1 = scmp.lt.s32.totalorder %s727_s11, %s723_s22 }
  0x22   : > { %p725_p12 = pnand %p724_p11, %p841_p5  ;;  %p730_p2 = por %p729_p1, %p728_p0 }
  0x23   : > { %627 = vmatmul.msk.f32.gmra.mxu2 %vm250_vm0, %v235_v6  ;;  %619 = vmatmul.msk.f32.gmra.mxu0 %vm250_vm0, %v227_v7 }
  0x24   : > { %p726_p13 = pneg %p725_p12 }
  0x26   : > { %p731_p3 = pnand %p730_p2, %p726_p13 }
  0x2b   : > { %628 = vmatmul.msk.f32.gmra.mxu2 %vm250_vm0, %v236_v8  ;;  %620 = vmatmul.msk.f32.gmra.mxu0 %vm250_vm0, %v228_v9 }
  0x33   : > { %629 = vmatmul.msk.f32.gmra.mxu2 %vm250_vm0, %v237_v10  ;;  %621 = vmatmul.msk.f32.gmra.mxu0 %vm250_vm0, %v229_v11 }
  0x3b   : > { %630 = vmatmul.msk.f32.gmra.mxu2 %vm250_vm0, %v238_v12  ;;  %622 = vmatmul.msk.f32.gmra.mxu0 %vm250_vm0, %v230_v13 }
  0x43   : > { %631 = vmatmul.msk.f32.gmra.mxu2 %vm250_vm0, %v239_v14  ;;  %623 = vmatmul.msk.f32.gmra.mxu0 %vm250_vm0, %v231_v15 }
  0x4b   : > { %632 = vmatmul.msk.f32.gmra.mxu2 %vm250_vm0, %v240_v16  ;;  %624 = vmatmul.msk.f32.gmra.mxu0 %vm250_vm0, %v232_v17 }
  0x53   : > { %633 = vmatmul.msk.f32.gmra.mxu2 %vm250_vm0, %v241_v18  ;;  %625 = vmatmul.msk.f32.gmra.mxu0 %vm250_vm0, %v233_v19 }
  0x98   : > { %v316_v25 = vpop.f32.mrf.mxu0 }
  0x99   : > { %v317_v26 = vadd.f32 %v916_v24, %v316_v25 }
  0x9b   : > { %v364_v27 = vmul.f32 0.01, %v317_v26 }
  0x9d   : > { %v380_v28 = vmax.f32 %v317_v26, %v364_v27  ;;  %v706_v26 = vld [vmem:[%s1012_s4] ss:$0 sm:$0xff] }
  0x9e   : > { %v340_v29 = vpop.f32.mrf.mxu2 }
  0x9f   : > { %v341_v30 = vadd.f32 %v916_v24, %v340_v29  ;;  %634 = vmatmul.msk.f32.vlgmr.msra.gmra.mxu1 %vm250_vm0, %v380_v28 }
  0xa0   : > { %v319_v31 = vpop.f32.mrf.mxu0 }
  0xa1   : > { %v372_v32 = vmul.f32 0.01, %v341_v30  ;;  %v320_v33 = vadd.f32 %v916_v24, %v319_v31 }
  0xa3   : > { %v388_v34 = vmax.f32 %v341_v30, %v372_v32  ;;  %v365_v35 = vmul.f32 0.01, %v320_v33 }
  0xa5   : > { %642 = vmatmul.msk.f32.vlgmr.msra.gmra.mxu3 %vm250_vm0, %v388_v34  ;;  %v381_v36 = vmax.f32 %v320_v33, %v365_v35 }
  0xa6   : > { %v343_v37 = vpop.f32.mrf.mxu2 }
  0xa7   : > { %v344_v38 = vadd.f32 %v916_v24, %v343_v37  ;;  %635 = vmatmul.msk.f32.gmra.mxu1 %vm250_vm0, %v381_v36 }
  0xa8   : > { %v322_v39 = vpop.f32.mrf.mxu0 }
  0xa9   : > { %v373_v40 = vmul.f32 0.01, %v344_v38  ;;  %v323_v41 = vadd.f32 %v916_v24, %v322_v39 }
  0xab   : > { %v389_v42 = vmax.f32 %v344_v38, %v373_v40  ;;  %v366_v43 = vmul.f32 0.01, %v323_v41 }
  0xad   : > { %643 = vmatmul.msk.f32.gmra.mxu3 %vm250_vm0, %v389_v42  ;;  %v382_v44 = vmax.f32 %v323_v41, %v366_v43 }
  0xae   : > { %v346_v45 = vpop.f32.mrf.mxu2 }
  0xaf   : > { %v347_v46 = vadd.f32 %v916_v24, %v346_v45  ;;  %636 = vmatmul.msk.f32.gmra.mxu1 %vm250_vm0, %v382_v44 }
  0xb0   : > { %v325_v47 = vpop.f32.mrf.mxu0 }
  0xb1   : > { %v374_v48 = vmul.f32 0.01, %v347_v46  ;;  %v326_v49 = vadd.f32 %v916_v24, %v325_v47 }
  0xb3   : > { %v390_v50 = vmax.f32 %v347_v46, %v374_v48  ;;  %v367_v51 = vmul.f32 0.01, %v326_v49 }
  0xb5   : > { %644 = vmatmul.msk.f32.gmra.mxu3 %vm250_vm0, %v390_v50  ;;  %v383_v52 = vmax.f32 %v326_v49, %v367_v51 }
  0xb6   : > { %v349_v53 = vpop.f32.mrf.mxu2 }
  0xb7   : > { %v350_v54 = vadd.f32 %v916_v24, %v349_v53  ;;  %637 = vmatmul.msk.f32.gmra.mxu1 %vm250_vm0, %v383_v52 }
  0xb8   : > { %v328_v55 = vpop.f32.mrf.mxu0 }
  0xb9   : > { %v375_v56 = vmul.f32 0.01, %v350_v54  ;;  %v329_v57 = vadd.f32 %v916_v24, %v328_v55 }
  0xbb   : > { %v391_v58 = vmax.f32 %v350_v54, %v375_v56  ;;  %v368_v59 = vmul.f32 0.01, %v329_v57 }
  0xbd   : > { %645 = vmatmul.msk.f32.gmra.mxu3 %vm250_vm0, %v391_v58  ;;  %v384_v60 = vmax.f32 %v329_v57, %v368_v59 }
  0xbe   : > { %v352_v61 = vpop.f32.mrf.mxu2 }
  0xbf   : > { %v353_v62 = vadd.f32 %v916_v24, %v352_v61  ;;  %638 = vmatmul.msk.f32.gmra.mxu1 %vm250_vm0, %v384_v60 }
  0xc0   : > { %v331_v63 = vpop.f32.mrf.mxu0 }
  0xc1   : > { %v376_v0 = vmul.f32 0.01, %v353_v62  ;;  %v332_v1 = vadd.f32 %v916_v24, %v331_v63 }
  0xc3   : > { %v392_v2 = vmax.f32 %v353_v62, %v376_v0  ;;  %v369_v3 = vmul.f32 0.01, %v332_v1 }
  0xc5   : > { %646 = vmatmul.msk.f32.gmra.mxu3 %vm250_vm0, %v392_v2  ;;  %v385_v4 = vmax.f32 %v332_v1, %v369_v3 }
  0xc6   : > { %v355_v5 = vpop.f32.mrf.mxu2 }
  0xc7   : > { %v356_v6 = vadd.f32 %v916_v24, %v355_v5  ;;  %639 = vmatmul.msk.f32.gmra.mxu1 %vm250_vm0, %v385_v4 }
  0xc8   : > { %v334_v7 = vpop.f32.mrf.mxu0 }
  0xc9   : > { %v377_v8 = vmul.f32 0.01, %v356_v6  ;;  %v335_v9 = vadd.f32 %v916_v24, %v334_v7 }
  0xcb   : > { %v393_v10 = vmax.f32 %v356_v6, %v377_v8  ;;  %v370_v11 = vmul.f32 0.01, %v335_v9 }
  0xcd   : > { %647 = vmatmul.msk.f32.gmra.mxu3 %vm250_vm0, %v393_v10  ;;  %v386_v12 = vmax.f32 %v335_v9, %v370_v11 }
  0xce   : > { %v358_v13 = vpop.f32.mrf.mxu2 }
  0xcf   : > { %v359_v14 = vadd.f32 %v916_v24, %v358_v13  ;;  %640 = vmatmul.msk.f32.gmra.mxu1 %vm250_vm0, %v386_v12 }
  0xd0   : > { %v337_v15 = vpop.f32.mrf.mxu0 }
  0xd1   : > { %v378_v16 = vmul.f32 0.01, %v359_v14  ;;  %v338_v17 = vadd.f32 %v916_v24, %v337_v15 }
  0xd3   : > { %v394_v18 = vmax.f32 %v359_v14, %v378_v16  ;;  %v371_v19 = vmul.f32 0.01, %v338_v17 }
  0xd5   : > { %648 = vmatmul.msk.f32.gmra.mxu3 %vm250_vm0, %v394_v18  ;;  %v387_v20 = vmax.f32 %v338_v17, %v371_v19 }
  0xd6   : > { %v361_v21 = vpop.f32.mrf.mxu2 }
  0xd7   : > { %v362_v22 = vadd.f32 %v916_v24, %v361_v21  ;;  %641 = vmatmul.msk.f32.gmra.mxu1 %vm250_vm0, %v387_v20 }
  0xd9   : > { %v379_v23 = vmul.f32 0.01, %v362_v22 }
  0xdb   : > { %v395_v25 = vmax.f32 %v362_v22, %v379_v23 }
  0xdd   : > { %649 = vmatmul.msk.f32.gmra.mxu3 %vm250_vm0, %v395_v25 }
 0x11c   : > { %v469_v27 = vpop.f32.mrf.mxu1 }
 0x11d   : > { %v470_v28 = vadd.f32 %v706_v26, %v469_v27 }
 0x11f   : > { %517 = vst [vmem:[%s956_s16] sm:$0xff] %v470_v28 }
 0x124   : > { %v472_v24 = vpop.f32.mrf.mxu1 }
 0x125   : > { %v473_v29 = vadd.f32 %v706_v26, %v472_v24 }
 0x127   : > { %518 = vst [vmem:[%s956_s16 + $0x8] sm:$0xff] %v473_v29 }
 0x128   : > { %v493_v30 = vpop.f32.mrf.mxu3 }
 0x129   : > { %v494_v31 = vadd.f32 %v706_v26, %v493_v30 }
 0x12b   : > { %525 = vst [vmem:[%s956_s16 + $0x40] sm:$0xff] %v494_v31 }
 0x12c   : > { %v475_v32 = vpop.f32.mrf.mxu1 }
 0x12d   : > { %v476_v33 = vadd.f32 %v706_v26, %v475_v32 }
 0x12f   : > { %519 = vst [vmem:[%s956_s16 + $0x10] sm:$0xff] %v476_v33 }
 0x130   : > { %v496_v34 = vpop.f32.mrf.mxu3 }
 0x131   : > { %v497_v35 = vadd.f32 %v706_v26, %v496_v34 }
 0x133   : > { %526 = vst [vmem:[%s956_s16 + $0x48] sm:$0xff] %v497_v35 }
 0x134   : > { %v478_v36 = vpop.f32.mrf.mxu1 }
 0x135   : > { %v479_v37 = vadd.f32 %v706_v26, %v478_v36 }
 0x137   : > { %520 = vst [vmem:[%s956_s16 + $0x18] sm:$0xff] %v479_v37 }
 0x138   : > { %v499_v38 = vpop.f32.mrf.mxu3 }
 0x139   : > { %v500_v39 = vadd.f32 %v706_v26, %v499_v38 }
 0x13b   : > { %527 = vst [vmem:[%s956_s16 + $0x50] sm:$0xff] %v500_v39 }
 0x13c   : > { %v481_v40 = vpop.f32.mrf.mxu1 }
 0x13d   : > { %v482_v41 = vadd.f32 %v706_v26, %v481_v40 }
 0x13f   : > { %521 = vst [vmem:[%s956_s16 + $0x20] sm:$0xff] %v482_v41 }
 0x140   : > { %v502_v42 = vpop.f32.mrf.mxu3 }
 0x141   : > { %v503_v43 = vadd.f32 %v706_v26, %v502_v42 }
 0x143   : > { %528 = vst [vmem:[%s956_s16 + $0x58] sm:$0xff] %v503_v43 }
 0x144   : > { %v484_v44 = vpop.f32.mrf.mxu1 }
 0x145   : > { %v485_v45 = vadd.f32 %v706_v26, %v484_v44 }
 0x147   : > { %522 = vst [vmem:[%s956_s16 + $0x28] sm:$0xff] %v485_v45 }
 0x148   : > { %v505_v46 = vpop.f32.mrf.mxu3 }
 0x149   : > { %v506_v47 = vadd.f32 %v706_v26, %v505_v46 }
 0x14b   : > { %529 = vst [vmem:[%s956_s16 + $0x60] sm:$0xff] %v506_v47 }
 0x14c   : > { %v487_v48 = vpop.f32.mrf.mxu1 }
 0x14d   : > { %v488_v49 = vadd.f32 %v706_v26, %v487_v48 }
 0x14f   : > { %523 = vst [vmem:[%s956_s16 + $0x30] sm:$0xff] %v488_v49 }
 0x150   : > { %v508_v50 = vpop.f32.mrf.mxu3 }
 0x151   : > { %v509_v51 = vadd.f32 %v706_v26, %v508_v50 }
 0x153   : > { %530 = vst [vmem:[%s956_s16 + $0x68] sm:$0xff] %v509_v51 }
 0x154   : > { %v490_v52 = vpop.f32.mrf.mxu1 }
 0x155   : > { %v491_v53 = vadd.f32 %v706_v26, %v490_v52 }
 0x157   : > { %524 = vst [vmem:[%s956_s16 + $0x38] sm:$0xff] %v491_v53 }
 0x158   : > { %v511_v54 = vpop.f32.mrf.mxu3 }
 0x159   : > { %v512_v55 = vadd.f32 %v706_v26, %v511_v54 }
 0x15b   : > { %531 = vst [vmem:[%s956_s16 + $0x70] sm:$0xff] %v512_v55 }
 0x160   : > { %v514_v56 = vpop.f32.mrf.mxu3 }
 0x161   : > { %v515_v57 = vadd.f32 %v706_v26, %v514_v56 }
 0x163   : > { %532 = vst [vmem:[%s956_s16 + $0x78] sm:$0xff] %v515_v57 }
 0x164   : > { %734 = shalt.err (!%p731_p3)
}
 0x165   : > { %s771_s12 = smov 128   ;;  %s772_s15 = smov 8  }
 0x166   : > { %664 = dma.vmem_to_hbm [thread:$0]  (%p841_p5), %s547_s30, 2048, %s549_s6, %s534_s7, %s771_s12, %s771_s12, %s772_s15  }
 0x167 PF: > { %p670_p4 = scmp.ge.s32.totalorder %s769_s21, 2  ;;  %s563_s16 = sand.u32 1, %s757_s18  }
 0x168   : > { %s564_s17 = scalar_lea.sflag [#allocation3], %s563_s16 }
 0x169   : > { %p667_p7 = pnand %p670_p4, %p845_p6 }
 0x16b   : > { %p668_p8 = pneg %p667_p7 }
 0x16d   : > { %752 = dma.done.wait (%p668_p8), %s564_s17, 2048  }
 0x16e   : > { %754 = vsyncadd (%p668_p8), %s564_s17, 4294965248  ;;  %p15_p9 = scmp.ge.s32.totalorder %s828_s24, 6   ;;  %s1016_s18 = smov %s761_s19 }
 0x16f   : > { %s1017_s19 = smov %s765_s20  ;;  %s1018_s20 = smov %s839_s27 }
 0x170   : > { %s1019_s21 = smov %s828_s24  ;;  %17 = sbr.rel (!%p15_p9) target bundleno = 3 (0x3), region = 75 }
 0x175   :  { %570 = vsyncpa [#allocation3], 1 }
 0x176   :  { %572 = vsyncpa [#allocation3 + $0x1], 1 }

</bundles_post_ra>
